<compile_context>
chip_gen: v6e
topology: v6e:2x2x1
jax: 0.10.0
libtpu: 0.0.40
codegen_flags: <defaults>
</compile_context>

<pallas_src>
import functools

import jax
import jax.numpy as jnp
from jax.experimental import pallas as pl
from jax.experimental.pallas import tpu as pltpu


# ----------------------- chip-aware budgets -----------------------

def _vmem_capacity_bytes():
    try:
        return int(pltpu.get_tpu_info().vmem_capacity_bytes)
    except Exception:
        return 64 * 1024 * 1024  # conservative default (v7x per-TC VMEM)


_VMEM_BYTES = _vmem_capacity_bytes()
# whole-array single-block matmul path must stay well under the scoped VMEM
# limit on every generation (v7x: 64 MiB physical / 32 MiB scoped).
_SMALL_LIMIT_BYTES = min(_VMEM_BYTES // 16, 4 * 1024 * 1024)


def _round_up(x, m):
    return ((x + m - 1) // m) * m


# ----------------------- Pallas matmul kernels (MXU) -----------------------
# Operands arrive as bf16 (cast in the wrappers); accumulation is f32.

def _mm_small_kernel(a_ref, b_ref, o_ref, *, relu):
    acc = jnp.dot(a_ref[...], b_ref[...], preferred_element_type=jnp.float32)
    if relu:
        acc = jnp.maximum(acc, 0.0)
    o_ref[...] = acc


def _matmul_small(a_bf, b_bf, relu):
    M, _ = a_bf.shape
    _, N = b_bf.shape
    return pl.pallas_call(
        functools.partial(_mm_small_kernel, relu=relu),
        out_shape=jax.ShapeDtypeStruct((M, N), jnp.float32),
        in_specs=[pl.BlockSpec(memory_space=pltpu.MemorySpace.VMEM)] * 2,
        out_specs=pl.BlockSpec(memory_space=pltpu.MemorySpace.VMEM),
    )(a_bf, b_bf)


def _mm_tiled_kernel(a_ref, b_ref, o_ref, *, relu):
    # Accumulate directly into the K-resident f32 output block: no acc scratch,
    # no epilogue VMEM->VMEM copy.
    k = pl.program_id(2)

    @pl.when(k == 0)
    def _():
        o_ref[...] = jnp.zeros_like(o_ref)

    o_ref[...] += jnp.dot(a_ref[...], b_ref[...],
                          preferred_element_type=jnp.float32)

    if relu:
        @pl.when(k == pl.num_programs(2) - 1)
        def _():
            o_ref[...] = jnp.maximum(o_ref[...], 0.0)


def _matmul_tiled(a_bf, b_bf, relu, tm=256, tn=256, tk=512):
    # Large-shape fallback: 256-wide output tiles (matched to v6e/v7x 256x256
    # MXU), K-last "arbitrary" reduction, M/N "parallel" for megacore sharding.
    # TODO(synk): on v5e raise tk / pipeline depth (pl.Buffered(3)) once bf16
    # tiles leave headroom; build upstream tensors pre-padded to avoid the
    # jnp.pad / output-slice HBM round trips.
    M, K = a_bf.shape
    _, N = b_bf.shape
    Mp, Kp, Np = _round_up(M, tm), _round_up(K, tk), _round_up(N, tn)
    a_p = jnp.pad(a_bf, ((0, Mp - M), (0, Kp - K)))
    b_p = jnp.pad(b_bf, ((0, Kp - K), (0, Np - N)))
    out = pl.pallas_call(
        functools.partial(_mm_tiled_kernel, relu=relu),
        out_shape=jax.ShapeDtypeStruct((Mp, Np), jnp.float32),
        grid_spec=pltpu.PrefetchScalarGridSpec(
            num_scalar_prefetch=0,
            grid=(Mp // tm, Np // tn, Kp // tk),
            in_specs=[pl.BlockSpec((tm, tk), lambda i, j, k: (i, k)),
                      pl.BlockSpec((tk, tn), lambda i, j, k: (k, j))],
            out_specs=pl.BlockSpec((tm, tn), lambda i, j, k: (i, j))),
        compiler_params=pltpu.CompilerParams(
            dimension_semantics=("parallel", "parallel", "arbitrary")),
    )(a_p, b_p)
    return out[:M, :N]


def pallas_matmul(a, b, relu=False):
    """C = A @ B (optional fused ReLU): bf16 operands, f32 MXU accumulation."""
    M, K = a.shape
    K2, N = b.shape
    assert K == K2
    a_bf = a.astype(jnp.bfloat16)
    b_bf = b.astype(jnp.bfloat16)
    # bf16 inputs + f32 output all resident at once on the single-block path
    if 2 * (M * K + K * N) + 4 * M * N <= _SMALL_LIMIT_BYTES:
        return _matmul_small(a_bf, b_bf, relu)
    return _matmul_tiled(a_bf, b_bf, relu)


# ----------------------- fused GCN + Highway (MXU + EUP + VPU) -----------------------

def _gcn_highway_kernel(a_ref, xb_ref, x1_ref, wt_ref, b_ref, o_ref):
    # x2 = relu(A_tile @ x)        (MXU, bf16 in / f32 acc)
    x2 = jnp.maximum(
        jnp.dot(a_ref[...], xb_ref[...], preferred_element_type=jnp.float32), 0.0)
    # gate = sigmoid(x1 @ W.T + b) (MXU + EUP)
    x1 = x1_ref[...]
    gate = jax.nn.sigmoid(
        jnp.dot(x1.astype(jnp.bfloat16), wt_ref[...],
                preferred_element_type=jnp.float32) + b_ref[...])
    # highway blend                (VPU) -- GCN output never touches HBM
    o_ref[...] = gate * x2 + (1.0 - gate) * x1


def gcn_highway_forward(W, b, x, edge_index):
    """highway(x, relu(gcn_agg(x))) as ONE Pallas kernel, tiled over rows."""
    N, H = x.shape
    j, i = edge_index[0], edge_index[1]
    deg = jax.ops.segment_sum(jnp.ones(i.shape, jnp.float32), i, N)
    deg_inv_sqrt = jnp.where(deg > 0, jax.lax.rsqrt(jnp.maximum(deg, 1e-12)), 0.0)
    norm = deg_inv_sqrt[j] * deg_inv_sqrt[i]
    # TODO(synk): dense adjacency only viable at demo sizes; swap for a CSR
    # scalar-prefetch gather/segment-sum kernel at realistic N.
    A_bf = dense_adj(i, j, norm, N, N).astype(jnp.bfloat16)

    tm = N if N <= 256 else 256
    Np = _round_up(N, tm)
    x_bf = x.astype(jnp.bfloat16)     # resident RHS for A @ x (bf16)
    x1 = x.astype(jnp.float32)        # f32 tile for gate input + blend
    if Np != N:
        A_bf = jnp.pad(A_bf, ((0, Np - N), (0, 0)))
        x1 = jnp.pad(x1, ((0, Np - N), (0, 0)))
    wt_bf = W.T.astype(jnp.bfloat16)
    b_row = b.reshape(1, -1).astype(jnp.float32)

    out = pl.pallas_call(
        _gcn_highway_kernel,
        out_shape=jax.ShapeDtypeStruct((Np, H), jnp.float32),
        grid_spec=pltpu.PrefetchScalarGridSpec(
            num_scalar_prefetch=0,
            grid=(Np // tm,),
            in_specs=[pl.BlockSpec((tm, N), lambda r: (r, 0)),   # A row tile (bf16)
                      pl.BlockSpec((N, H), lambda r: (0, 0)),    # x (bf16, resident)
                      pl.BlockSpec((tm, H), lambda r: (r, 0)),   # x1 tile (f32)
                      pl.BlockSpec((H, H), lambda r: (0, 0)),    # W.T (bf16, resident)
                      pl.BlockSpec((1, H), lambda r: (0, 0))],   # bias (resident)
            out_specs=pl.BlockSpec((tm, H), lambda r: (r, 0))),
        compiler_params=pltpu.CompilerParams(
            dimension_semantics=("parallel",)),
    )(A_bf, x_bf, x1, wt_bf, b_row)
    return out[:N] if Np != N else out


# ----------------------- glue helpers (plain JAX) -----------------------

def leaky_relu(x):
    return jax.nn.leaky_relu(x, negative_slope=0.01)


def segment_softmax(e, index, num_segments):
    # torch_geometric.utils.softmax semantics (per-group, numerically stable)
    seg_max = jax.ops.segment_max(e, index, num_segments)
    seg_max = jnp.where(jnp.isfinite(seg_max), seg_max, 0.0)
    ex = jnp.exp(e - seg_max[index])
    seg_sum = jax.ops.segment_sum(ex, index, num_segments)
    return ex / (seg_sum[index] + 1e-16)


def dense_adj(rows, cols, vals, n_rows, n_cols):
    # dense realisation of torch_sparse.spmm's COO matrix (duplicates summed)
    A = jnp.zeros((n_rows, n_cols), jnp.float32)
    return A.at[rows, cols].add(vals.astype(jnp.float32))


# ----------------------- module forward functions -----------------------

def gat_e_to_r_forward(p, x_e, edge_index, rel, num_rel):
    h, t = edge_index[0], edge_index[1]
    N = x_e.shape[0]
    R = p["w_h"].shape[0]

    # ONE MXU launch yields x_r_h, x_r_t AND the four attention-score columns:
    #   x_e @ [ w_h.T | w_t.T | w_h.T@[a_h1;a_t1].T | w_t.T@[a_h2;a_t2].T ]
    a1 = jnp.concatenate([p["a_h1"], p["a_t1"]], axis=0)      # [2, R]
    a2 = jnp.concatenate([p["a_h2"], p["a_t2"]], axis=0)      # [2, R]
    w_cat = jnp.concatenate(
        [p["w_h"].T, p["w_t"].T, p["w_h"].T @ a1.T, p["w_t"].T @ a2.T], axis=1)
    proj = pallas_matmul(x_e, w_cat)                           # [N, 2R+4]
    x_r_h, x_r_t = proj[:, :R], proj[:, R:2 * R]
    s_h, s_t = proj[:, 2 * R:2 * R + 2], proj[:, 2 * R + 2:2 * R + 4]

    e1 = s_h[h, 0] + s_t[t, 0]
    e2 = s_h[h, 1] + s_t[t, 1]
    alpha1 = segment_softmax(leaky_relu(e1), rel, num_rel)
    alpha2 = segment_softmax(leaky_relu(e2), rel, num_rel)

    # x_r = A1 @ x_r_h + A2 @ x_r_t  ==  [A1 | A2] @ [[x_r_h],[x_r_t]]  (one launch)
    A1 = dense_adj(rel, h, alpha1, num_rel, N)
    A2 = dense_adj(rel, t, alpha2, num_rel, N)
    A = jnp.concatenate([A1, A2], axis=1)            # [num_rel, 2N]
    xs = jnp.concatenate([x_r_h, x_r_t], axis=0)     # [2N, R]
    return pallas_matmul(A, xs)


def gat_r_to_e_forward(p, x_e, x_r, edge_index, rel):
    h, t = edge_index[0], edge_index[1]
    N, R = x_e.shape[0], x_r.shape[0]

    # tiny [N,2]-style reductions stay in XLA (sub-(8,128) launches are overhead)
    s_e = x_e @ jnp.concatenate([p["a_h"], p["a_t"]], axis=0).T   # [N, 2]
    s_r = (x_r @ p["a_r"].T)[:, 0]                                # [num_rel]
    e_h = s_e[h, 0]
    e_t = s_e[t, 1]
    e_r = s_r[rel]

    alpha_h = segment_softmax(leaky_relu(e_h + e_r), h, N)
    alpha_t = segment_softmax(leaky_relu(e_t + e_r), t, N)

    # both aggregations share RHS x_r -> row-stacked adjacencies, one MXU launch
    A_h = dense_adj(h, rel, alpha_h, N, R)
    A_t = dense_adj(t, rel, alpha_t, N, R)
    A = jnp.concatenate([A_h, A_t], axis=0)          # [2N, num_rel]
    agg = pallas_matmul(A, x_r)                      # [2N, r_hidden]
    return jnp.concatenate([agg[:N], agg[N:]], axis=1)


def gat_forward(p, x, edge_index):
    N = x.shape[0]
    j, i = edge_index[0], edge_index[1]
    s = x @ jnp.concatenate([p["a_i"], p["a_j"]], axis=0).T   # [N, 2] (XLA)
    e = s[i, 0] + s[j, 1]
    alpha = segment_softmax(leaky_relu(e), i, N)
    A = dense_adj(i, j, alpha, N, N)
    return pallas_matmul(A, x, relu=True)


def raga_forward(params, x_e, edge_index, rel, edge_index_all, rel_all, *, num_rel):
    del rel_all  # unused by the reference forward
    x_e = gcn_highway_forward(params["hw1_W"], params["hw1_b"], x_e, edge_index_all)
    x_e = gcn_highway_forward(params["hw2_W"], params["hw2_b"], x_e, edge_index_all)
    x_r = gat_e_to_r_forward(params["e2r"], x_e, edge_index, rel, num_rel)
    x_e = jnp.concatenate(
        [x_e, gat_r_to_e_forward(params["r2e"], x_e, x_r, edge_index, rel)], axis=1)
    x_e = jnp.concatenate(
        [x_e, gat_forward(params["gat"], x_e, edge_index_all)], axis=1)
    return x_e


# ----------------------- deterministic parameter init -----------------------

def init_params(key, e_hidden, r_hidden):
    ghid = e_hidden + 2 * r_hidden
    ks = iter(jax.random.split(key, 32))

    def lin(out_f, in_f):
        return (jax.random.normal(next(ks), (out_f, in_f), jnp.float32)
                / jnp.sqrt(jnp.float32(in_f)))

    return {
        "hw1_W": lin(e_hidden, e_hidden),
        "hw1_b": jax.random.normal(next(ks), (e_hidden,), jnp.float32) * 0.01,
        "hw2_W": lin(e_hidden, e_hidden),
        "hw2_b": jax.random.normal(next(ks), (e_hidden,), jnp.float32) * 0.01,
        "e2r": {
            "a_h1": lin(1, r_hidden), "a_h2": lin(1, r_hidden),
            "a_t1": lin(1, r_hidden), "a_t2": lin(1, r_hidden),
            "w_h": lin(r_hidden, e_hidden), "w_t": lin(r_hidden, e_hidden),
        },
        "r2e": {
            "a_h": lin(1, e_hidden), "a_t": lin(1, e_hidden), "a_r": lin(1, r_hidden),
        },
        "gat": {
            "a_i": lin(1, ghid), "a_j": lin(1, ghid), "a_r": lin(1, ghid),  # a_r unused, parity
        },
    }


# ----------------------- main -----------------------

if __name__ == "__main__":
    N, E, E_EXTRA, NUM_REL = 16, 40, 32, 5
    E_HIDDEN, R_HIDDEN = 32, 16

    key = jax.random.PRNGKey(0)
    k_x, k_h, k_t, k_r, k_s, k_d, k_p = jax.random.split(key, 7)

    x_e = jax.random.normal(k_x, (N, E_HIDDEN), jnp.float32)

    # relation-typed edges
    edge_h = jax.random.randint(k_h, (E,), 0, N, dtype=jnp.int32)
    edge_t = jax.random.randint(k_t, (E,), 0, N, dtype=jnp.int32)
    edge_index = jnp.stack([edge_h, edge_t])
    rel = jax.random.randint(k_r, (E,), 0, NUM_REL, dtype=jnp.int32)
    rel = rel.at[0].set(NUM_REL - 1)  # make rel.max()+1 == NUM_REL deterministic

    # full entity graph (self-loops guarantee nonzero degree everywhere)
    src = jnp.concatenate([jnp.arange(N, dtype=jnp.int32),
                           jax.random.randint(k_s, (E_EXTRA,), 0, N, dtype=jnp.int32)])
    dst = jnp.concatenate([jnp.arange(N, dtype=jnp.int32),
                           jax.random.randint(k_d, (E_EXTRA,), 0, N, dtype=jnp.int32)])
    edge_index_all = jnp.stack([src, dst])
    rel_all = jnp.zeros((edge_index_all.shape[1],), jnp.int32)  # unused by forward

    params = init_params(k_p, E_HIDDEN, R_HIDDEN)

    # whole forward jitted; num_rel is a static Python int (no host sync)
    forward = jax.jit(functools.partial(raga_forward, num_rel=NUM_REL))
    out = forward(params, x_e, edge_index, rel, edge_index_all, rel_all)
    out = jax.block_until_ready(out)

    expected_shape = (N, 2 * (E_HIDDEN + 2 * R_HIDDEN))
    assert out.shape == expected_shape, (out.shape, expected_shape)
    assert bool(jnp.all(jnp.isfinite(out)))
    print("KERNEL_OK")
</pallas_src>

<mosaic_0001>
module attributes {stable_mosaic.version = 11 : i64} {
  func.func private @main(%arg0: i32) attributes {dimension_semantics = [#tpu.dimension_semantics<core_parallel>], iteration_bounds = array<i64: 2>, tpu.core_type = #tpu.core_type<sc_scalar_subcore>, window_params = []} {
    return
  }
}

module attributes {stable_mosaic.version = 11 : i64} {
  func.func private @main(%arg0: i32) attributes {dimension_semantics = [#tpu.dimension_semantics<core_parallel>], iteration_bounds = array<i64: 2>, tpu.core_type = #tpu.core_type<sc_scalar_subcore>, window_params = []} {
    return
  }
}

module attributes {stable_mosaic.version = 11 : i64} {
  func.func @_mm_small_kernel(%arg0: memref<16x32xbf16, #tpu.memory_space<vmem>>, %arg1: memref<32x36xbf16, #tpu.memory_space<vmem>>, %arg2: memref<16x36xf32, #tpu.memory_space<vmem>>) attributes {dimension_semantics = [], scalar_prefetch = 0 : i64, scratch_operands = 0 : i64, tpu.core_type = #tpu.core_type<tc>} {
    %c0 = arith.constant 0 : index
    %c0_0 = arith.constant 0 : index
    %0 = vector.load %arg0[%c0, %c0_0] : memref<16x32xbf16, #tpu.memory_space<vmem>>, vector<16x32xbf16>
    %c0_1 = arith.constant 0 : index
    %c0_2 = arith.constant 0 : index
    %1 = vector.load %arg1[%c0_1, %c0_2] : memref<32x36xbf16, #tpu.memory_space<vmem>>, vector<32x36xbf16>
    %cst = arith.constant dense<0.000000e+00> : vector<16x36xf32>
    %2 = tpu.matmul %0, %1, %cst {dimension_numbers = #tpu.dot_dimension_numbers<[1], [0], [0], [1], [0, 0, 1, 1], [], []>} : vector<16x32xbf16>, vector<32x36xbf16>, vector<16x36xf32> -> vector<16x36xf32>
    %c0_3 = arith.constant 0 : index
    %c0_4 = arith.constant 0 : index
    %3 = vector.load %arg2[%c0_3, %c0_4] : memref<16x36xf32, #tpu.memory_space<vmem>>, vector<16x36xf32>
    tpu.vector_store %arg2[%c0_3, %c0_4], %2 {strides = array<i32>} : memref<16x36xf32, #tpu.memory_space<vmem>>, vector<16x36xf32>,
    return
  }
}

module attributes {stable_mosaic.version = 11 : i64} {
  func.func @_gcn_highway_kernel(%arg0: i32, %arg1: memref<16x16xbf16, #tpu.memory_space<vmem>>, %arg2: memref<16x32xbf16, #tpu.memory_space<vmem>>, %arg3: memref<16x32xf32, #tpu.memory_space<vmem>>, %arg4: memref<32x32xbf16, #tpu.memory_space<vmem>>, %arg5: memref<1x32xf32, #tpu.memory_space<vmem>>, %arg6: memref<16x32xf32, #tpu.memory_space<vmem>>) attributes {dimension_semantics = [#tpu.dimension_semantics<parallel>], iteration_bounds = array<i64: 1>, scalar_prefetch = 0 : i64, scratch_operands = 0 : i64, tpu.core_type = #tpu.core_type<tc>, window_params = [{transform_indices = @transform_0, window_bounds = array<i64: 16, 16>}, {pipeline_mode = #tpu.pipeline_mode<synchronous>, transform_indices = @transform_1, window_bounds = array<i64: 16, 32>}, {transform_indices = @transform_2, window_bounds = array<i64: 16, 32>}, {pipeline_mode = #tpu.pipeline_mode<synchronous>, transform_indices = @transform_3, window_bounds = array<i64: 32, 32>}, {pipeline_mode = #tpu.pipeline_mode<synchronous>, transform_indices = @transform_4, window_bounds = array<i64: 1, 32>}, {transform_indices = @transform_5, window_bounds = array<i64: 16, 32>}]} {
    %c0 = arith.constant 0 : index
    %c0_0 = arith.constant 0 : index
    %0 = vector.load %arg1[%c0, %c0_0] : memref<16x16xbf16, #tpu.memory_space<vmem>>, vector<16x16xbf16>
    %c0_1 = arith.constant 0 : index
    %c0_2 = arith.constant 0 : index
    %1 = vector.load %arg2[%c0_1, %c0_2] : memref<16x32xbf16, #tpu.memory_space<vmem>>, vector<16x32xbf16>
    %cst = arith.constant dense<0.000000e+00> : vector<16x32xf32>
    %2 = tpu.matmul %0, %1, %cst {dimension_numbers = #tpu.dot_dimension_numbers<[1], [0], [0], [1], [0, 0, 1, 1], [], []>} : vector<16x16xbf16>, vector<16x32xbf16>, vector<16x32xf32> -> vector<16x32xf32>
    %cst_3 = arith.constant 0.000000e+00 : f32
    %3 = vector.broadcast %cst_3 : f32 to vector<16x32xf32>
    %4 = arith.maximumf %2, %3 : vector<16x32xf32>
    %c0_4 = arith.constant 0 : index
    %c0_5 = arith.constant 0 : index
    %5 = vector.load %arg3[%c0_4, %c0_5] : memref<16x32xf32, #tpu.memory_space<vmem>>, vector<16x32xf32>
    %6 = arith.truncf %5 : vector<16x32xf32> to vector<16x32xbf16>
    %c0_6 = arith.constant 0 : index
    %c0_7 = arith.constant 0 : index
    %7 = vector.load %arg4[%c0_6, %c0_7] : memref<32x32xbf16, #tpu.memory_space<vmem>>, vector<32x32xbf16>
    %cst_8 = arith.constant dense<0.000000e+00> : vector<16x32xf32>
    %8 = tpu.matmul %6, %7, %cst_8 {dimension_numbers = #tpu.dot_dimension_numbers<[1], [0], [0], [1], [0, 0, 1, 1], [], []>} : vector<16x32xbf16>, vector<32x32xbf16>, vector<16x32xf32> -> vector<16x32xf32>
    %c0_9 = arith.constant 0 : index
    %c0_10 = arith.constant 0 : index
    %9 = vector.load %arg5[%c0_9, %c0_10] : memref<1x32xf32, #tpu.memory_space<vmem>>, vector<1x32xf32>
    %10 = vector.broadcast %9 : vector<1x32xf32> to vector<16x32xf32>
    %11 = arith.addf %8, %10 : vector<16x32xf32>
    %12 = arith.negf %11 : vector<16x32xf32>
    %13 = math.exp %12 : vector<16x32xf32>
    %cst_11 = arith.constant 1.000000e+00 : f32
    %14 = vector.broadcast %cst_11 : f32 to vector<16x32xf32>
    %15 = arith.addf %14, %13 : vector<16x32xf32>
    %16 = arith.divf %14, %15 : vector<16x32xf32>
    %17 = arith.mulf %16, %4 : vector<16x32xf32>
    %cst_12 = arith.constant 1.000000e+00 : f32
    %18 = vector.broadcast %cst_12 : f32 to vector<16x32xf32>
    %19 = arith.subf %18, %16 : vector<16x32xf32>
    %20 = arith.mulf %19, %5 : vector<16x32xf32>
    %21 = arith.addf %17, %20 : vector<16x32xf32>
    %c0_13 = arith.constant 0 : index
    %c0_14 = arith.constant 0 : index
    %22 = vector.load %arg6[%c0_13, %c0_14] : memref<16x32xf32, #tpu.memory_space<vmem>>, vector<16x32xf32>
    tpu.vector_store %arg6[%c0_13, %c0_14], %21 {strides = array<i32>} : memref<16x32xf32, #tpu.memory_space<vmem>>, vector<16x32xf32>,
    return
  }
  func.func @transform_0(%arg0: i32) -> (i32, i32) {
    %c0_i32 = arith.constant 0 : i32
    %c0_i32_0 = arith.constant 0 : i32
    return %arg0, %c0_i32 : i32, i32
  }
  func.func @transform_1(%arg0: i32) -> (i32, i32) {
    %c0_i32 = arith.constant 0 : i32
    %c0_i32_0 = arith.constant 0 : i32
    %c0_i32_1 = arith.constant 0 : i32
    return %c0_i32, %c0_i32_0 : i32, i32
  }
  func.func @transform_2(%arg0: i32) -> (i32, i32) {
    %c0_i32 = arith.constant 0 : i32
    %c0_i32_0 = arith.constant 0 : i32
    return %arg0, %c0_i32 : i32, i32
  }
  func.func @transform_3(%arg0: i32) -> (i32, i32) {
    %c0_i32 = arith.constant 0 : i32
    %c0_i32_0 = arith.constant 0 : i32
    %c0_i32_1 = arith.constant 0 : i32
    return %c0_i32, %c0_i32_0 : i32, i32
  }
  func.func @transform_4(%arg0: i32) -> (i32, i32) {
    %c0_i32 = arith.constant 0 : i32
    %c0_i32_0 = arith.constant 0 : i32
    %c0_i32_1 = arith.constant 0 : i32
    return %c0_i32, %c0_i32_0 : i32, i32
  }
  func.func @transform_5(%arg0: i32) -> (i32, i32) {
    %c0_i32 = arith.constant 0 : i32
    %c0_i32_0 = arith.constant 0 : i32
    return %arg0, %c0_i32 : i32, i32
  }
}

module attributes {stable_mosaic.version = 11 : i64} {
  func.func @_mm_small_kernel(%arg0: memref<5x32xbf16, #tpu.memory_space<vmem>>, %arg1: memref<32x16xbf16, #tpu.memory_space<vmem>>, %arg2: memref<5x16xf32, #tpu.memory_space<vmem>>) attributes {dimension_semantics = [], scalar_prefetch = 0 : i64, scratch_operands = 0 : i64, tpu.core_type = #tpu.core_type<tc>} {
    %c0 = arith.constant 0 : index
    %c0_0 = arith.constant 0 : index
    %0 = vector.load %arg0[%c0, %c0_0] : memref<5x32xbf16, #tpu.memory_space<vmem>>, vector<5x32xbf16>
    %c0_1 = arith.constant 0 : index
    %c0_2 = arith.constant 0 : index
    %1 = vector.load %arg1[%c0_1, %c0_2] : memref<32x16xbf16, #tpu.memory_space<vmem>>, vector<32x16xbf16>
    %cst = arith.constant dense<0.000000e+00> : vector<5x16xf32>
    %2 = tpu.matmul %0, %1, %cst {dimension_numbers = #tpu.dot_dimension_numbers<[1], [0], [0], [1], [0, 0, 1, 1], [], []>} : vector<5x32xbf16>, vector<32x16xbf16>, vector<5x16xf32> -> vector<5x16xf32>
    %c0_3 = arith.constant 0 : index
    %c0_4 = arith.constant 0 : index
    %3 = vector.load %arg2[%c0_3, %c0_4] : memref<5x16xf32, #tpu.memory_space<vmem>>, vector<5x16xf32>
    tpu.vector_store %arg2[%c0_3, %c0_4], %2 {strides = array<i32>} : memref<5x16xf32, #tpu.memory_space<vmem>>, vector<5x16xf32>,
    return
  }
}

module attributes {stable_mosaic.version = 11 : i64} {
  func.func @_mm_small_kernel(%arg0: memref<32x5xbf16, #tpu.memory_space<vmem>>, %arg1: memref<5x16xbf16, #tpu.memory_space<vmem>>, %arg2: memref<32x16xf32, #tpu.memory_space<vmem>>) attributes {dimension_semantics = [], scalar_prefetch = 0 : i64, scratch_operands = 0 : i64, tpu.core_type = #tpu.core_type<tc>} {
    %c0 = arith.constant 0 : index
    %c0_0 = arith.constant 0 : index
    %0 = vector.load %arg0[%c0, %c0_0] : memref<32x5xbf16, #tpu.memory_space<vmem>>, vector<32x5xbf16>
    %c0_1 = arith.constant 0 : index
    %c0_2 = arith.constant 0 : index
    %1 = vector.load %arg1[%c0_1, %c0_2] : memref<5x16xbf16, #tpu.memory_space<vmem>>, vector<5x16xbf16>
    %cst = arith.constant dense<0.000000e+00> : vector<32x16xf32>
    %2 = tpu.matmul %0, %1, %cst {dimension_numbers = #tpu.dot_dimension_numbers<[1], [0], [0], [1], [0, 0, 1, 1], [], []>} : vector<32x5xbf16>, vector<5x16xbf16>, vector<32x16xf32> -> vector<32x16xf32>
    %c0_3 = arith.constant 0 : index
    %c0_4 = arith.constant 0 : index
    %3 = vector.load %arg2[%c0_3, %c0_4] : memref<32x16xf32, #tpu.memory_space<vmem>>, vector<32x16xf32>
    tpu.vector_store %arg2[%c0_3, %c0_4], %2 {strides = array<i32>} : memref<32x16xf32, #tpu.memory_space<vmem>>, vector<32x16xf32>,
    return
  }
}

module attributes {stable_mosaic.version = 11 : i64} {
  func.func @_mm_small_kernel(%arg0: memref<16x16xbf16, #tpu.memory_space<vmem>>, %arg1: memref<16x64xbf16, #tpu.memory_space<vmem>>, %arg2: memref<16x64xf32, #tpu.memory_space<vmem>>) attributes {dimension_semantics = [], scalar_prefetch = 0 : i64, scratch_operands = 0 : i64, tpu.core_type = #tpu.core_type<tc>} {
    %c0 = arith.constant 0 : index
    %c0_0 = arith.constant 0 : index
    %0 = vector.load %arg0[%c0, %c0_0] : memref<16x16xbf16, #tpu.memory_space<vmem>>, vector<16x16xbf16>
    %c0_1 = arith.constant 0 : index
    %c0_2 = arith.constant 0 : index
    %1 = vector.load %arg1[%c0_1, %c0_2] : memref<16x64xbf16, #tpu.memory_space<vmem>>, vector<16x64xbf16>
    %cst = arith.constant dense<0.000000e+00> : vector<16x64xf32>
    %2 = tpu.matmul %0, %1, %cst {dimension_numbers = #tpu.dot_dimension_numbers<[1], [0], [0], [1], [0, 0, 1, 1], [], []>} : vector<16x16xbf16>, vector<16x64xbf16>, vector<16x64xf32> -> vector<16x64xf32>
    %cst_3 = arith.constant 0.000000e+00 : f32
    %3 = vector.broadcast %cst_3 : f32 to vector<16x64xf32>
    %4 = arith.maximumf %2, %3 : vector<16x64xf32>
    %c0_4 = arith.constant 0 : index
    %c0_5 = arith.constant 0 : index
    %5 = vector.load %arg2[%c0_4, %c0_5] : memref<16x64xf32, #tpu.memory_space<vmem>>, vector<16x64xf32>
    tpu.vector_store %arg2[%c0_4, %c0_5], %4 {strides = array<i32>} : memref<16x64xf32, #tpu.memory_space<vmem>>, vector<16x64xf32>,
    return
  }
}

</mosaic_0001>

<bundles_post_ra>
// kernel: mul.11
= control target key start
LH: loop header
LB: loop body
LE: loop exit
PB: predicated region body
PF: predicated region fallthrough
CT: control target
= control target key end

     0   :  { %s34_s0 = inlined_call_operand.vmem [shape: f32[48], index: 0, kind: input, shape index: {}]   ;;  %s35_s1 = inlined_call_operand.vmem [shape: f32[48], index: 1, kind: input, shape index: {}]   ;;  %s36_s2 = inlined_call_operand.vmem [shape: f32[48], index: 2, kind: output, shape index: {}]  }
   0x1   :  { %v3_v0 = vld [vmem:[%s34_s0] sm:$0x1] }
   0x2   :  { %v4_v1 = vld [vmem:[%s35_s1] sm:$0x1] }
   0x3   :  { %v7_v2 = vmul.f32 %v4_v1, %v3_v0 }
   0x5   :  { %9 = vst [vmem:[%s36_s2] sm:$0x1] %v7_v2 }

// kernel: raga_forward.8
= control target key start
LH: loop header
LB: loop body
LE: loop exit
PB: predicated region body
PF: predicated region fallthrough
CT: control target
= control target key end

     0   :  { %v107_v0 = vmov 0.0   ;;  %vm108_vm0 = vmmov 0   ;;  %vm35_vm1 = vcmask 261120   ;;  %vm80_vm2 = vcmask 293888   ;;  %s139_s1 = inlined_call_operand.vmem [shape: bf16[32,36], index: 1, kind: input, shape index: {}]   ;;  %s140_s0 = inlined_call_operand.vmem [shape: bf16[16,32], index: 0, kind: input, shape index: {}]   ;;  %s141_s2 = inlined_call_operand.vmem [shape: f32[16,36], index: 2, kind: output, shape index: {}]  }
   0x1   :  { %94 = vmatprep.subr.bf16.mxu0 %v107_v0  ;;  %v104_v1 = vld [vmem:[%s139_s1 + $0x8] sm:$0xff]   ;;  %98 = vmatprep.mubr.msk.bf16.mxu0 %vm108_vm0, %v107_v0  ;;  %v105_v2 = vld [vmem:[%s139_s1] sm:$0xff]  }
   0x2   :  { %95 = vmatpush3.bf16.msra.mxu0 %v104_v1  ;;  %v106_v3 = vld [vmem:[%s140_s0] sm:$0xff]  }
   0x3   :  { %96 = vmatprep.subr.bf16.mxu0 %v107_v0 }
   0x6   :  { %97 = vmatpush3.bf16.msra.mxu0 %v105_v2 }
   0x9   :  { %99 = vmatmul.mubr.msk.bf16.vlgmr.msra.gmra.mxu0 %vm35_vm1, %v106_v3 }
  0xc9   :  { %v73_v4 = vpop.f32.mrf.mxu0 }
  0xca   :  { %81 = vst.msk [vmem:[%s141_s2] sm:$0xff] %vm80_vm2, %v73_v4 }
  0xcb   :  { %v100_v5 = vpop.f32.mrf.mxu0 }
  0xcd   :  { %v76_v6 = vpop.f32.mrf.mxu0 }
  0xce   :  { %82 = vst.msk [vmem:[%s141_s2 + $0x8] sm:$0xff] %vm80_vm2, %v76_v6 }
  0xcf   :  { %v101_v7 = vpop.f32.mrf.mxu0 }

// kernel: raga_forward.6
= control target key start
LH: loop header
LB: loop body
LE: loop exit
PB: predicated region body
PF: predicated region fallthrough
CT: control target
= control target key end

     0   :  { %v222_v0 = vmov 0.0   ;;  %vm223_vm0 = vmmov 0   ;;  %vm36_vm1 = vcmask 130048   ;;  %vm109_vm2 = vcmask 261120   ;;  %s284_s3 = inlined_call_operand.vmem [shape: bf16[32,32], index: 3, kind: input, shape index: {}]   ;;  %s285_s2 = inlined_call_operand.vmem [shape: f32[16,32], index: 2, kind: input, shape index: {}]   ;;  %s286_s1 = inlined_call_operand.vmem [shape: bf16[16,32], index: 1, kind: input, shape index: {}]   ;;  %s287_s0 = inlined_call_operand.vmem [shape: bf16[16,16], index: 0, kind: input, shape index: {}]   ;;  %s288_s4 = inlined_call_operand.vmem [shape: f32[1,32], index: 4, kind: input, shape index: {}]   ;;  %s289_s5 = inlined_call_operand.vmem [shape: f32[16,32], index: 5, kind: output, shape index: {}]  }
   0x1   :  { %200 = vmatprep.subr.bf16.mxu1 %v222_v0  ;;  %v210_v1 = vld [vmem:[%s284_s3 + $0x8] sm:$0xff]   ;;  %204 = vmatprep.mubr.msk.bf16.mxu1 %vm223_vm0, %v222_v0  ;;  %v211_v2 = vld [vmem:[%s284_s3] sm:$0xff]  }
   0x2   :  { %194 = vmatprep.subr.bf16.mxu0 %v222_v0  ;;  %196 = vmatprep.mubr.msk.bf16.mxu0 %vm223_vm0, %v222_v0  ;;  %v83_v3 = vld [vmem:[%s285_s2] sm:$0xff]  ;;  %v84_v4 = vld [vmem:[%s285_s2 + $0x8] sm:$0xff] }
   0x3   :  { %201 = vmatpush3.bf16.msra.mxu1 %v210_v1  ;;  %v212_v5 = vld [vmem:[%s286_s1] sm:$0xff]   ;;  %v85_v7 = vpack.c.bf16 %v84_v4, %v83_v3 }
   0x4   :  { %202 = vmatprep.subr.bf16.mxu1 %v222_v0  ;;  %v213_v6 = vld [vmem:[%s287_s0] sm:$0xff]   ;;  %195 = vmatpush3.bf16.msra.mxu0 %v212_v5 }
   0x5   :  { %v183_v8 = vld [vmem:[%s288_s4] ss:$0 sm:$0xff] }
   0x7   :  { %203 = vmatpush3.bf16.msra.mxu1 %v211_v2  ;;  %197 = vmatmul.mubr.msk.bf16.vlgmr.msra.gmra.mxu0 %vm36_vm1, %v213_v6 }
   0xa   :  { %205 = vmatmul.mubr.msk.bf16.vlgmr.msra.gmra.mxu1 %vm109_vm2, %v85_v7 }
  0xc7   :  { %v74_v9 = vpop.f32.mrf.mxu0 }
  0xc8   :  { %v81_v25 = vmax.f32 %v74_v9, 0.0 }
  0xc9   :  { %v198_v12 = vpop.f32.mrf.mxu0 }
  0xca   :  { %v147_v10 = vpop.f32.mrf.mxu1 }
  0xcb   :  { %v148_v11 = vadd.f32 %v183_v8, %v147_v10  ;;  %v77_v15 = vpop.f32.mrf.mxu0 }
  0xcc   :  { %v206_v13 = vpop.f32.mrf.mxu1  ;;  %v82_v32 = vmax.f32 %v77_v15, 0.0 }
  0xcd   :  { %v187_v14 = vmul.f32 -1.442695, %v148_v11  ;;  %v199_v18 = vpop.f32.mrf.mxu0 }
  0xce   :  { %v150_v16 = vpop.f32.mrf.mxu1 }
  0xcf   :  { %214 = vpow2.f32 %v187_v14  ;;  %v151_v17 = vadd.f32 %v183_v8, %v150_v16 }
  0xd0   :  { %v207_v19 = vpop.f32.mrf.mxu1 }
  0xd1   :  { %v188_v20 = vmul.f32 -1.442695, %v151_v17 }
  0xd3   :  { %216 = vpow2.f32 %v188_v20 }
  0xdc   :  { %v215_v21 = vpop.eup %214 }
  0xdd   :  { %v160_v22 = vadd.f32 1.0, %v215_v21 }
  0xdf   :  { %218 = vrcp.f32 %v160_v22 }
  0xe0   :  { %v217_v23 = vpop.eup %216 }
  0xe1   :  { %v161_v24 = vadd.f32 1.0, %v217_v23 }
  0xe3   :  { %220 = vrcp.f32 %v161_v24 }
  0xec   :  { %v219_v26 = vpop.eup %218 }
  0xed   :  { %v168_v27 = vsub.f32 1.0, %v219_v26  ;;  %v166_v28 = vmul.f32 %v219_v26, %v81_v25 }
  0xef   :  { %v170_v29 = vmul.f32 %v168_v27, %v83_v3 }
  0xf0   :  { %v221_v30 = vpop.eup %220 }
  0xf1   :  { %v172_v31 = vadd.f32 %v170_v29, %v166_v28  ;;  %v169_v33 = vsub.f32 1.0, %v221_v30  ;;  %v167_v34 = vmul.f32 %v221_v30, %v82_v32 }
  0xf3   :  { %174 = vst.msk [vmem:[%s289_s5] sm:$0xff] %vm109_vm2, %v172_v31  ;;  %v171_v35 = vmul.f32 %v169_v33, %v84_v4 }
  0xf5   :  { %v173_v36 = vadd.f32 %v171_v35, %v167_v34 }
  0xf7   :  { %175 = vst.msk [vmem:[%s289_s5 + $0x8] sm:$0xff] %vm109_vm2, %v173_v36 }

// kernel: raga_forward.9
= control target key start
LH: loop header
LB: loop body
LE: loop exit
PB: predicated region body
PF: predicated region fallthrough
CT: control target
= control target key end

     0   :  { %v97_v0 = vmov 0.0   ;;  %vm98_vm0 = vmmov 0   ;;  %vm29_vm1 = vcmask 261120   ;;  %vm73_vm2 = vcmask 126976   ;;  %s126_s1 = inlined_call_operand.vmem [shape: bf16[32,16], index: 1, kind: input, shape index: {}]   ;;  %s127_s0 = inlined_call_operand.vmem [shape: bf16[5,32], index: 0, kind: input, shape index: {}]   ;;  %s128_s2 = inlined_call_operand.vmem [shape: f32[5,16], index: 2, kind: output, shape index: {}]  }
   0x1   :  { %85 = vmatprep.subr.bf16.mxu0 %v97_v0  ;;  %v95_v1 = vld [vmem:[%s126_s1 + $0x8] sm:$0xff]   ;;  %89 = vmatprep.mubr.msk.bf16.mxu0 %vm98_vm0, %v97_v0  ;;  %v96_v2 = vld [vmem:[%s126_s1] sm:$0xff]  }
   0x2   :  { %86 = vmatpush3.bf16.msra.mxu0 %v95_v1  ;;  %v12_v3 = vld [vmem:[%s127_s0] sm:$0x7] }
   0x3   :  { %87 = vmatprep.subr.bf16.mxu0 %v97_v0 }
   0x6   :  { %88 = vmatpush3.bf16.msra.mxu0 %v96_v2 }
   0x9   :  { %90 = vmatmul.mubr.msk.bf16.vlgmr.msra.gmra.mxu0 %vm29_vm1, %v12_v3 }
  0xc9   :  { %v67_v4 = vpop.f32.mrf.mxu0 }
  0xca   :  { %74 = vst.msk [vmem:[%s128_s2] sm:$0x1f] %vm73_vm2, %v67_v4 }
  0xcb   :  { %v91_v5 = vpop.f32.mrf.mxu0 }
  0xcd   :  { %v70_v6 = vpop.f32.mrf.mxu0 }
  0xcf   :  { %v92_v7 = vpop.f32.mrf.mxu0 }

// kernel: raga_forward.10
= control target key start
LH: loop header
LB: loop body
LE: loop exit
PB: predicated region body
PF: predicated region fallthrough
CT: control target
= control target key end

     0   :  { %vm34_vm0 = vcmask 1041408   ;;  %vm35_vm1 = vcmask 1042432   ;;  %vm27_vm2 = vcmask 39936   ;;  %v115_v1 = vmov 65535   ;;  %s152_s1 = inlined_call_operand.vmem [shape: bf16[5,16], index: 1, kind: input, shape index: {}]   ;;  %s153_s0 = inlined_call_operand.vmem [shape: bf16[32,5], index: 0, kind: input, shape index: {}]   ;;  %s154_s2 = inlined_call_operand.vmem [shape: f32[32,16], index: 2, kind: output, shape index: {}]  }
   0x1   :  { %v16_v0 = vld [vmem:[%s152_s1] sm:$0x7]  ;;  %v36_v2 = vsel %vm34_vm0, 4294967295, %v115_v1  ;;  %v114_v6 = vld [vmem:[%s153_s0 + $0x8] sm:$0xff]   ;;  %vm90_vm3 = vcmask 130048  }
   0x2   :  { %v113_v3 = vld [vmem:[%s153_s0] sm:$0xff]   ;;  %v37_v4 = vsel %vm35_vm1, %v36_v2, 0 }
   0x3   :  { %v39_v5 = vand.u32 %v37_v4, %v16_v0  ;;  %108 = vmatprep.mubr.msk.bf16.mxu0 %vm27_vm2, %v113_v3 }
   0x5   :  { %106 = vmatprep.subr.bf16.mxu0 %v39_v5 }
   0x6   :  { %107 = vmatpush3.bf16.msra.mxu0 %v39_v5 }
   0x9   :  { %109 = vmatmul.mubr.msk.bf16.vlgmr.msra.gmra.mxu0 %vm27_vm2, %v114_v6 }
  0xc9   :  { %v110_v7 = vpop.f32.mrf.mxu0 }
  0xca   :  { %93 = vst.msk [vmem:[%s154_s2 + $0x10] sm:$0xff] %vm90_vm3, %v110_v7 }
  0xcb   :  { %v75_v8 = vpop.f32.mrf.mxu0 }
  0xcc   :  { %91 = vst.msk [vmem:[%s154_s2] sm:$0xff] %vm90_vm3, %v75_v8 }
  0xcd   :  { %v111_v9 = vpop.f32.mrf.mxu0 }
  0xce   :  { %94 = vst.msk [vmem:[%s154_s2 + $0x18] sm:$0xff] %vm90_vm3, %v111_v9 }
  0xcf   :  { %v78_v10 = vpop.f32.mrf.mxu0 }
  0xd0   :  { %92 = vst.msk [vmem:[%s154_s2 + $0x8] sm:$0xff] %vm90_vm3, %v78_v10 }

// kernel: raga_forward.11
= control target key start
LH: loop header
LB: loop body
LE: loop exit
PB: predicated region body
PF: predicated region fallthrough
CT: control target
= control target key end

     0   :  { %v96_v0 = vmov 0.0   ;;  %vm97_vm0 = vmmov 0   ;;  %vm27_vm1 = vcmask 130048   ;;  %vm74_vm2 = vcmask 523264   ;;  %s125_s1 = inlined_call_operand.vmem [shape: bf16[16,64], index: 1, kind: input, shape index: {}]   ;;  %s126_s0 = inlined_call_operand.vmem [shape: bf16[16,16], index: 0, kind: input, shape index: {}]   ;;  %s127_s2 = inlined_call_operand.vmem [shape: f32[16,64], index: 2, kind: output, shape index: {}]  }
   0x1   :  { %86 = vmatprep.subr.bf16.mxu0 %v96_v0  ;;  %v94_v1 = vld [vmem:[%s125_s1] sm:$0xff]   ;;  %88 = vmatprep.mubr.msk.bf16.mxu0 %vm97_vm0, %v96_v0 }
   0x2   :  { %v95_v2 = vld [vmem:[%s126_s0] sm:$0xff]   ;;  %87 = vmatpush3.bf16.msra.mxu0 %v94_v1 }
   0x5   :  { %89 = vmatmul.mubr.msk.bf16.vlgmr.msra.gmra.mxu0 %vm27_vm1, %v95_v2 }
  0xc5   :  { %v65_v3 = vpop.f32.mrf.mxu0 }
  0xc6   :  { %v72_v4 = vmax.f32 %v65_v3, 0.0 }
  0xc7   :  { %v90_v5 = vpop.f32.mrf.mxu0 }
  0xc8   :  { %75 = vst.msk [vmem:[%s127_s2] sm:$0xff] %vm74_vm2, %v72_v4 }
  0xc9   :  { %v68_v6 = vpop.f32.mrf.mxu0 }
  0xca   :  { %v73_v7 = vmax.f32 %v68_v6, 0.0 }
  0xcb   :  { %v91_v8 = vpop.f32.mrf.mxu0 }
  0xcc   :  { %76 = vst.msk [vmem:[%s127_s2 + $0x8] sm:$0xff] %vm74_vm2, %v73_v7 }

</bundles_post_ra>
